<compile_context>
chip_gen: v5e
topology: v5e:2x2
jax: 0.10.0
libtpu: 0.0.40
codegen_flags: <defaults>
</compile_context>

<pallas_src>
import jax
import jax.numpy as jnp
import numpy as np
from jax.experimental import pallas as pl
from jax.experimental.pallas import tpu as pltpu

# Module constants (from __init__ with steps=20, if_tranc=True, tranc=50)
STEPS = 20
START = 50          # self.start = self.tranc because if_tranc=True
MASK_SPLIT = 185
END = 192


def _weights_sum_loss_kernel(w_ref, sel_ref, out_ref):
    # w_ref:   (B, N)   float32 in VMEM
    # sel_ref: (1, 2S)  int32   in VMEM, lane-major: [x1_0..x1_{S-1}, x2_0..x2_{S-1}]
    # out_ref: (1, 1)   float32 in SMEM (scalar total loss)
    B, N = w_ref.shape
    S2 = sel_ref.shape[1]          # 2 * STEPS (derived, not hardcoded)
    S = S2 // 2

    w = w_ref[...]
    if w.dtype != jnp.float32:     # input is f32 today; guarded cast if bf16 ever arrives
        w = w.astype(jnp.float32)

    # avg = mean(w[:, START:MASK_SPLIT], axis=1), as an f32 lane-masked reduction on
    # the VPU (no lane-misaligned slice, no MXU involvement for the 1/135 term).
    lane = jax.lax.broadcasted_iota(jnp.int32, (B, N), 1)
    win = (lane >= START) & (lane < MASK_SPLIT)
    inv_win = jnp.float32(1.0 / float(MASK_SPLIT - START))
    avg = jnp.sum(jnp.where(win, w, 0.0), axis=1, keepdims=True) * inv_win   # (B, 1)

    # One-hot gather matrix OH (N, 2S): OH[n, s] = (n == sel[s]).
    # sel is a lane-major row -> free sublane broadcast in the compare.
    feat = jax.lax.broadcasted_iota(jnp.int32, (N, S2), 0)
    oh = (feat == sel_ref[...]).astype(jnp.float32)                         # (N, 2S)

    # Single plain NN matmul on the MXU: (B, N) @ (N, 2S) -> (B, 2S) = [w1 | w2].
    g = jax.lax.dot_general(w, oh, (((1,), (0,)), ((), ())),
                            preferred_element_type=jnp.float32)             # (B, 2S)

    w1 = g[:, :S]            # (B, S): gathered w[:, x1_s]
    w2 = g[:, S:]            # (B, S): gathered w[:, x2_s]
    d1 = w1 - avg            # (B, S)
    d2 = w2 - w1             # (B, S)

    # total = (1/B) * (sum(d1^2) - sum(d2^2))   (MSE mean over batch, summed over steps)
    out_ref[0, 0] = (jnp.sum(d1 * d1) - jnp.sum(d2 * d2)) * jnp.float32(1.0 / B)


def weights_sum_loss(weights, x1_idx, x2_idx):
    """weights: (B, N) float32; x1_idx/x2_idx: (STEPS, 1) int32. Returns scalar loss."""
    B, N = weights.shape
    S = int(np.prod(x1_idx.shape))
    # Single lane-major index row (1, 2S): one contiguous lane-dense DMA.
    sel_idx = jnp.concatenate(
        [jnp.reshape(x1_idx, (1, S)), jnp.reshape(x2_idx, (1, S))], axis=1
    ).astype(jnp.int32)

    out = pl.pallas_call(
        _weights_sum_loss_kernel,
        out_shape=jax.ShapeDtypeStruct((1, 1), jnp.float32),
        in_specs=[
            pl.BlockSpec(memory_space=pltpu.MemorySpace.VMEM),
            pl.BlockSpec(memory_space=pltpu.MemorySpace.VMEM),
        ],
        out_specs=pl.BlockSpec(memory_space=pltpu.MemorySpace.SMEM),
        cost_estimate=pl.CostEstimate(
            flops=2 * B * N * (2 * S) + 2 * B * N + 6 * B * S,
            transcendentals=0,
            bytes_accessed=B * N * 4 + (2 * S) * 4 + 4,
        ),
    )(weights, sel_idx)
    return out[0, 0]


def _reference(weights, x1_idx, x2_idx):
    """Pure-JAX f32 reference mirroring the PyTorch forward (first call)."""
    w = weights.astype(jnp.float32)
    avg = jnp.mean(w[:, START:MASK_SPLIT], axis=1)  # (B,)
    total = 0.0
    for s in range(x1_idx.shape[0]):
        w1 = w[:, int(x1_idx[s, 0])]
        w2 = w[:, int(x2_idx[s, 0])]
        total = total + jnp.mean((w1 - avg) ** 2) - jnp.mean((w2 - w1) ** 2)
    return total


if __name__ == "__main__":
    B, N = 4, END  # feature dim must cover indices up to end=192

    key = jax.random.PRNGKey(0)
    kw, k1, k2 = jax.random.split(key, 3)
    weights = jax.random.normal(kw, (B, N), dtype=jnp.float32)
    # Deterministic stand-in for the module's host-side random.sample draws.
    x1_idx = jax.random.randint(k1, (STEPS, 1), START, MASK_SPLIT, dtype=jnp.int32)
    x2_idx = jax.random.randint(k2, (STEPS, 1), MASK_SPLIT, END, dtype=jnp.int32)

    loss = weights_sum_loss(weights, x1_idx, x2_idx)
    loss = jax.block_until_ready(loss)

    ref = jax.block_until_ready(_reference(weights, np.asarray(x1_idx), np.asarray(x2_idx)))
    # Tight tolerance doubles as verification that the default f32 matmul lowering
    # is not a single-pass bf16 demotion (review precision concern).
    assert np.allclose(np.asarray(loss), np.asarray(ref), rtol=1e-5, atol=1e-4), (loss, ref)

    print("KERNEL_OK")
</pallas_src>

<mosaic_0001>
module attributes {stable_mosaic.version = 11 : i64} {
  func.func @_weights_sum_loss_kernel(%arg0: memref<4x192xf32, #tpu.memory_space<vmem>>, %arg1: memref<1x40xi32, #tpu.memory_space<vmem>>, %arg2: memref<1x1xf32, #tpu.memory_space<smem>>) attributes {dimension_semantics = [], scalar_prefetch = 0 : i64, scratch_operands = 0 : i64, tpu.core_type = #tpu.core_type<tc>} {
    %c0 = arith.constant 0 : index
    %c0_0 = arith.constant 0 : index
    %0 = vector.load %arg0[%c0, %c0_0] : memref<4x192xf32, #tpu.memory_space<vmem>>, vector<4x192xf32>
    %1 = tpu.iota {dimensions = array<i32: 1>} : vector<4x192xi32>
    %c50_i32 = arith.constant 50 : i32
    %2 = vector.broadcast %c50_i32 : i32 to vector<4x192xi32>
    %3 = arith.cmpi sge, %1, %2 : vector<4x192xi32>
    %c185_i32 = arith.constant 185 : i32
    %4 = vector.broadcast %c185_i32 : i32 to vector<4x192xi32>
    %5 = arith.cmpi slt, %1, %4 : vector<4x192xi32>
    %6 = arith.andi %3, %5 : vector<4x192xi1>
    %cst = arith.constant 0.000000e+00 : f32
    %7 = vector.broadcast %cst : f32 to vector<4x192xf32>
    %8 = arith.select %6, %0, %7 : vector<4x192xi1>, vector<4x192xf32>
    %cst_1 = arith.constant dense<0.000000e+00> : vector<4xf32>
    %9 = vector.multi_reduction <add>, %8, %cst_1 [1] : vector<4x192xf32> to vector<4xf32>
    %10 = vector.shape_cast %9 : vector<4xf32> to vector<4x1xf32>
    %cst_2 = arith.constant 0.00740740728 : f32
    %11 = vector.broadcast %cst_2 : f32 to vector<4x1xf32>
    %12 = arith.mulf %10, %11 : vector<4x1xf32>
    %13 = tpu.iota {dimensions = array<i32: 0>} : vector<192x40xi32>
    %c0_3 = arith.constant 0 : index
    %c0_4 = arith.constant 0 : index
    %14 = vector.load %arg1[%c0_3, %c0_4] : memref<1x40xi32, #tpu.memory_space<vmem>>, vector<1x40xi32>
    %15 = vector.broadcast %14 : vector<1x40xi32> to vector<192x40xi32>
    %16 = arith.cmpi eq, %13, %15 : vector<192x40xi32>
    %17 = arith.extui %16 : vector<192x40xi1> to vector<192x40xi32>
    %18 = arith.sitofp %17 : vector<192x40xi32> to vector<192x40xf32>
    %cst_5 = arith.constant dense<0.000000e+00> : vector<4x40xf32>
    %19 = tpu.matmul %0, %18, %cst_5 {dimension_numbers = #tpu.dot_dimension_numbers<[1], [0], [0], [1], [0, 0, 1, 1], [], []>} : vector<4x192xf32>, vector<192x40xf32>, vector<4x40xf32> -> vector<4x40xf32>
    %20 = vector.extract_strided_slice %19 {offsets = [0, 0], sizes = [4, 20], strides = [1, 1]} : vector<4x40xf32> to vector<4x20xf32>
    %21 = vector.extract_strided_slice %19 {offsets = [0, 20], sizes = [4, 20], strides = [1, 1]} : vector<4x40xf32> to vector<4x20xf32>
    %22 = vector.broadcast %12 : vector<4x1xf32> to vector<4x20xf32>
    %23 = arith.subf %20, %22 : vector<4x20xf32>
    %24 = arith.subf %21, %20 : vector<4x20xf32>
    %25 = arith.mulf %23, %23 : vector<4x20xf32>
    %26 = vector.shape_cast %25 : vector<4x20xf32> to vector<1x4x20xf32>
    %cst_6 = arith.constant dense<0.000000e+00> : vector<1xf32>
    %27 = vector.multi_reduction <add>, %26, %cst_6 [1, 2] : vector<1x4x20xf32> to vector<1xf32>
    %28 = vector.shape_cast %27 : vector<1xf32> to vector<1x1x1xf32>
    %29 = vector.extract %28[0, 0, 0] : f32 from vector<1x1x1xf32>
    %30 = arith.mulf %24, %24 : vector<4x20xf32>
    %31 = vector.shape_cast %30 : vector<4x20xf32> to vector<1x4x20xf32>
    %cst_7 = arith.constant dense<0.000000e+00> : vector<1xf32>
    %32 = vector.multi_reduction <add>, %31, %cst_7 [1, 2] : vector<1x4x20xf32> to vector<1xf32>
    %33 = vector.shape_cast %32 : vector<1xf32> to vector<1x1x1xf32>
    %34 = vector.extract %33[0, 0, 0] : f32 from vector<1x1x1xf32>
    %35 = arith.subf %29, %34 : f32
    %cst_8 = arith.constant 2.500000e-01 : f32
    %36 = arith.mulf %35, %cst_8 : f32
    %c0_9 = arith.constant 0 : index
    %c0_10 = arith.constant 0 : index
    %37 = memref.load %arg2[%c0_9, %c0_10] : memref<1x1xf32, #tpu.memory_space<smem>>
    memref.store %36, %arg2[%c0_9, %c0_10] : memref<1x1xf32, #tpu.memory_space<smem>>
    return
  }
}

</mosaic_0001>

<bundles_post_ra>
// kernel: tpu_custom_call.1
= control target key start
LH: loop header
LB: loop body
LE: loop exit
PB: predicated region body
PF: predicated region fallthrough
CT: control target
= control target key end

     0   :  { %7 = vsyncpa [#allocation3], 0  ;;  %s506_s0 = inlined_call_operand.hbm [shape: f32[4,192], index: 0, kind: input, shape index: {}]   ;;  %s507_s1 = inlined_call_operand.hbm [shape: s32[1,40], index: 1, kind: input, shape index: {}]   ;;  %s508_s2 = inlined_call_operand.hbm [shape: f32[1,1], index: 2, kind: output, shape index: {}]  }
   0x1   :  { %8 = vsyncpa [#allocation6], 0 }
   0x2   :  { %9 = vsyncpa [#allocation4], 0  ;;  %s15_s11 = sshll.u32 %s506_s0, 4  ;;  %s392_s12 = smov [#allocation2]   ;;  %s16_s11 = int_to_ptr.hbm [resolvable:$true] %s15_s11 }
   0x3   :  { %s17_s13 = sshll.u32 %s392_s12, 4  ;;  %s26_s16 = sshll.u32 %s507_s1, 4  ;;  %s18_s13 = int_to_ptr.vmem [resolvable:$true] %s17_s13  ;;  %s27_s16 = int_to_ptr.hbm [resolvable:$true] %s26_s16 }
   0x4   :  { %20 = dma.hbm_to_vmem [thread:$0]  %s16_s11, 128, %s18_s13, [#allocation3]  }
   0x5   :  { %s393_s17 = smov [#allocation5]  }
   0x6   :  { %s28_s18 = sshll.u32 %s393_s17, 4  ;;  %s29_s18 = int_to_ptr.vmem [resolvable:$true] %s28_s18 }
   0x7   :  { %31 = dma.hbm_to_vmem [thread:$0]  %s27_s16, 16, %s29_s18, [#allocation6]  }
   0x8   :  { %386 = dma.done.wait [#allocation3], 128  }
   0x9   :  { %387 = vsyncadd [#allocation3], 4294967168 }
   0xa   :  { %388 = dma.done.wait [#allocation6], 16  }
   0xb   :  { %389 = vsyncadd [#allocation6], 4294967280  ;;  %v41_v0 = vlaneseq  ;;  %v40_v6 = vld [vmem:[#allocation2] sm:$0xff]  ;;  %v426_v7 = vld [vmem:[#allocation5] ss:$0 sm:$0xff]  ;;  %v394_v11 = vmov 1.0  }
   0xc   :  { %51 = vst [vmem:[#allocation1] ss:$2 sm:$0xff] %v40_v6  ;;  %s395_s0 = smov 20   ;;  %s396_s1 = smov 108  }
   0xd   :  { %v420_v1 = vshrl.u32 %v41_v0, 7  ;;  %v42_v35 = vand.u32 127, %v41_v0  ;;  %s254_s22 = sshll.u32 %s508_s2, 4  ;;  %s397_s26 = smov [#allocation7]   ;;  %s255_s22 = int_to_ptr.hbm [resolvable:$true] %s254_s22 }
   0xf   :  { %v82_v2 = vadd.s32 120, %v420_v1  ;;  %v81_v3 = vadd.s32 112, %v420_v1  ;;  %v80_v4 = vadd.s32 104, %v420_v1  ;;  %v90_v5 = vadd.s32 184, %v420_v1 }
  0x10   :  { %v89_v8 = vadd.s32 176, %v420_v1  ;;  %v79_v9 = vadd.s32 96, %v420_v1  ;;  %v88_v10 = vadd.s32 168, %v420_v1  ;;  %v78_v12 = vadd.s32 88, %v420_v1 }
  0x11   :  { %vm108_vm0 = vcmp.eq.s32.totalorder %v82_v2, %v426_v7  ;;  %vm107_vm1 = vcmp.eq.s32.totalorder %v81_v3, %v426_v7  ;;  %vm106_vm2 = vcmp.eq.s32.totalorder %v80_v4, %v426_v7  ;;  %vm116_vm3 = vcmp.eq.s32.totalorder %v90_v5, %v426_v7 }
  0x12   :  { %290 = vmatpush.msk.msra.mxu0 %vm108_vm0, %v394_v11  ;;  %vm115_vm4 = vcmp.eq.s32.totalorder %v89_v8, %v426_v7  ;;  %v87_v13 = vadd.s32 160, %v420_v1  ;;  %306 = vmatpush.msk.msra.mxu1 %vm116_vm3, %v394_v11  ;;  %vm105_vm5 = vcmp.eq.s32.totalorder %v79_v9, %v426_v7  ;;  %v77_v14 = vadd.s32 80, %v420_v1 }
  0x13   :  { %vm114_vm6 = vcmp.eq.s32.totalorder %v88_v10, %v426_v7  ;;  %v86_v15 = vadd.s32 152, %v420_v1  ;;  %v76_v16 = vadd.s32 72, %v420_v1  ;;  %v85_v17 = vadd.s32 144, %v420_v1  ;;  %v449_v18 = vld.sshfl [vmem:[#allocation1] sm:$0xff pattern:$0x75316420] }
  0x14   :  { %291 = vmatpush.msk.msra.mxu0 %vm107_vm1, %v394_v11  ;;  %307 = vmatpush.msk.msra.mxu1 %vm115_vm4, %v394_v11  ;;  %v451_v19 = vld.sshfl [vmem:[#allocation1 + $0x8] sm:$0xff pattern:$0x75316420]  ;;  %vm104_vm7 = vcmp.eq.s32.totalorder %v78_v12, %v426_v7  ;;  %vm113_vm8 = vcmp.eq.s32.totalorder %v87_v13, %v426_v7  ;;  %vm103_vm9 = vcmp.eq.s32.totalorder %v77_v14, %v426_v7  ;;  %v75_v20 = vadd.s32 64, %v420_v1 }
  0x15   :  { %165 = vst [vmem:[#allocation1] ss:$2 sm:$0xff] %v40_v6  ;;  %vm112_vm10 = vcmp.eq.s32.totalorder %v86_v15, %v426_v7  ;;  %v84_v21 = vadd.s32 136, %v420_v1  ;;  %vm102_vm11 = vcmp.eq.s32.totalorder %v76_v16, %v426_v7  ;;  %v74_v22 = vadd.s32 56, %v420_v1 }
  0x16   :  { %292 = vmatpush.msk.msra.mxu0 %vm106_vm2, %v394_v11  ;;  %308 = vmatpush.msk.msra.mxu1 %vm114_vm6, %v394_v11  ;;  %vm111_vm12 = vcmp.eq.s32.totalorder %v85_v17, %v426_v7  ;;  %v83_v23 = vadd.s32 128, %v420_v1  ;;  %vm101_vm13 = vcmp.eq.s32.totalorder %v75_v20, %v426_v7  ;;  %v73_v24 = vadd.s32 48, %v420_v1 }
  0x17   :  { %vm110_vm14 = vcmp.eq.s32.totalorder %v84_v21, %v426_v7  ;;  %vm100_vm15 = vcmp.eq.s32.totalorder %v74_v22, %v426_v7  ;;  %v72_v25 = vadd.s32 40, %v420_v1  ;;  %vm169_vm1 = vcmask 523264  }
  0x18   :  { %293 = vmatpush.msk.msra.mxu0 %vm105_vm5, %v394_v11  ;;  %309 = vmatpush.msk.msra.mxu1 %vm113_vm8, %v394_v11  ;;  %vm109_vm0 = vcmp.eq.s32.totalorder %v83_v23, %v426_v7  ;;  %vm99_vm2 = vcmp.eq.s32.totalorder %v73_v24, %v426_v7  ;;  %v71_v27 = vadd.s32 32, %v420_v1  ;;  %v70_v28 = vadd.s32 24, %v420_v1 }
  0x19   :  { %vm98_vm3 = vcmp.eq.s32.totalorder %v72_v25, %v426_v7  ;;  %v69_v29 = vadd.s32 16, %v420_v1  ;;  %v68_v30 = vadd.s32 8, %v420_v1  ;;  %vm93_vm8 = vcmp.eq.s32.totalorder %v420_v1, %v426_v7 }
  0x1a   :  { %294 = vmatpush.msk.msra.mxu0 %vm104_vm7, %v394_v11  ;;  %310 = vmatpush.msk.msra.mxu1 %vm112_vm10, %v394_v11  ;;  %vm97_vm4 = vcmp.eq.s32.totalorder %v71_v27, %v426_v7  ;;  %vm96_vm5 = vcmp.eq.s32.totalorder %v70_v28, %v426_v7  ;;  %v43_v36 = vadd.s32 128, %v42_v35 }
  0x1b   :  { %vm95_vm6 = vcmp.eq.s32.totalorder %v69_v29, %v426_v7  ;;  %vm94_vm7 = vcmp.eq.s32.totalorder %v68_v30, %v426_v7 }
  0x1c   :  { %295 = vmatpush.msk.msra.mxu0 %vm103_vm9, %v394_v11  ;;  %311 = vmatpush.msk.msra.mxu1 %vm111_vm12, %v394_v11  ;;  %v167_v26 = vld.sshfl [vmem:[#allocation1 + $0x8] sm:$0xff pattern:$0x75316420]  ;;  %v166_v31 = vld.sshfl [vmem:[#allocation1] sm:$0xff pattern:$0x75316420] }
  0x1d   :  { %vm44_vm9 = vcmp.ge.s32.totalorder %v42_v35, 50  ;;  %vm47_vm10 = vcmp.lt.s32.totalorder %v43_v36, 185  ;;  %vm60_vm12 = vcmask 519168  }
  0x1e   :  { %296 = vmatpush.msk.msra.mxu0 %vm102_vm11, %v394_v11  ;;  %312 = vmatpush.msk.msra.mxu1 %vm110_vm14, %v394_v11  ;;  %v56_v37 = vsel %vm44_vm9, %v449_v18, 0.0  ;;  %v57_v38 = vsel %vm47_vm10, %v451_v19, 0.0  ;;  %vm58_vm11 = vcmask 1043456  }
  0x1f   :  { %v59_v39 = vsel %vm58_vm11, %v56_v37, 0.0  ;;  %v61_v40 = vsel %vm60_vm12, %v57_v38, 0.0 }
  0x20   :  { %297 = vmatpush.msk.msra.mxu0 %vm101_vm13, %v394_v11  ;;  %313 = vmatpush.msk.msra.mxu1 %vm109_vm0, %v394_v11  ;;  %v62_v41 = vadd.f32 %v61_v40, %v59_v39  ;;  %vm219_vm13 = vcmask 158720  }
  0x21   :  { %314 = vmatmul.msk.f32.vlgmr.msra.gmra.mxu1 %vm169_vm1, %v167_v26 }
  0x22   :  { %298 = vmatpush.msk.msra.mxu0 %vm100_vm15, %v394_v11 }
  0x24   :  { %299 = vmatpush.msk.msra.mxu0 %vm99_vm2, %v394_v11 }
  0x26   :  { %300 = vmatpush.msk.msra.mxu0 %vm98_vm3, %v394_v11 }
  0x28   :  { %301 = vmatpush.msk.msra.mxu0 %vm97_vm4, %v394_v11 }
  0x2a   :  { %302 = vmatpush.msk.msra.mxu0 %vm96_vm5, %v394_v11 }
  0x2c   :  { %303 = vmatpush.msk.msra.mxu0 %vm95_vm6, %v394_v11 }
  0x2e   :  { %304 = vmatpush.msk.msra.mxu0 %vm94_vm7, %v394_v11 }
  0x30   :  { %305 = vmatpush.msk.msra.mxu0 %vm93_vm8, %v394_v11 }
  0x31   :  { %188 = vmatmul.f32.vlgmr.msra.gmra.mxu0 %v166_v31 }
  0x9e   :  { %v209_v32 = vpop.f32.mrf.mxu1 }
  0xae   :  { %v189_v33 = vpop.f32.mrf.mxu0 }
  0xaf   :  { %v210_v34 = vadd.f32 %v209_v32, %v189_v33 }
  0xb1   :  { %214 = vrot.lane.b32.xlu0 %v210_v34, %s395_s0 }
  0xdb   :  { %63 = vadd.xlane.f32.xlu0 %v62_v41 }
 0x123   :  { %v215_v42 = vpop.permute.xlu0 %214 }
 0x124   :  { %v217_v43 = vsub.f32 %v210_v34, %v215_v42 }
 0x126   :  { %v230_v44 = vmul.f32 %v217_v43, %v217_v43 }
 0x128   :  { %232 = vrot.lane.b32.xlu1 %v230_v44, %s396_s1 }
 0x14e   :  { %v64_v45 = vpop.xlane.xlu0 %63 }
 0x14f   :  { %v65_v46 = vmul.f32 0.0074074073, %v64_v45 }
 0x151   :  { %v212_v47 = vsub.f32 %v210_v34, %v65_v46 }
 0x153   :  { %v218_v48 = vmul.f32 %v212_v47, %v212_v47 }
 0x155   :  { %v220_v49 = vsel %vm219_vm13, %v218_v48, 0.0 }
 0x156   :  { %221 = vadd.xlane.f32.xlu1 %v220_v49 }
 0x19a   :  { %v233_v50 = vpop.permute.xlu1 %232 }
 0x19b   :  { %v235_v51 = vsel %vm219_vm13, %v233_v50, 0.0 }
 0x19c   :  { %236 = vadd.xlane.f32.xlu2 %v235_v51 }
 0x1c9   :  { %v222_v52 = vpop.xlane.xlu1 %221 }
 0x1ca   :  { %v223_v53 = vrot.slane %v222_v52, 4 }
 0x1cc   :  { %v224_v54 = vadd.f32 %v223_v53, %v222_v52 }
 0x1ce   :  { %v225_v55 = vrot.slane %v224_v54, 2 }
 0x1d0   :  { %v226_v56 = vadd.f32 %v225_v55, %v224_v54 }
 0x1d2   :  { %v227_v57 = vrot.slane %v226_v56, 1 }
 0x1d4   :  { %v228_v58 = vadd.f32 %v227_v57, %v226_v56 }
 0x1d6   :  { %315 = vpush %v228_v58 }
 0x207   :  { %s316_s19 = spop %315 }
 0x20f   :  { %v237_v59 = vpop.xlane.xlu2 %236 }
 0x210   :  { %v238_v60 = vrot.slane %v237_v59, 4 }
 0x212   :  { %v239_v61 = vadd.f32 %v238_v60, %v237_v59 }
 0x214   :  { %v240_v62 = vrot.slane %v239_v61, 2 }
 0x216   :  { %v241_v63 = vadd.f32 %v240_v62, %v239_v61 }
 0x218   :  { %v242_v0 = vrot.slane %v241_v63, 1 }
 0x21a   :  { %v243_v1 = vadd.f32 %v242_v0, %v241_v63 }
 0x21c   :  { %317 = vpush %v243_v1 }
 0x24d   :  { %s318_s23 = spop %317 }
 0x24e   :  { %s245_s24 = ssub.f32 %s316_s19, %s318_s23 }
 0x250   :  { %s246_s25 = smul.f32 0.25, %s245_s24 }
 0x252   :  { %248 = sst [smem:[#allocation7]] %s246_s25 }
 0x253   :  { %257 = dma.smem_to_hbm %s397_s26, 16, %s255_s22, [#allocation4]  }
 0x254   :  { %390 = dma.done.wait [#allocation4], 16  }
 0x255   :  { %391 = vsyncadd [#allocation4], 4294967280 }
 0x256   :  { %262 = sfence }
 0x257   :  { %263 = vsyncpa [#allocation3], 1 }
 0x258   :  { %264 = vsyncpa [#allocation6], 1 }
 0x259   :  { %265 = vsyncpa [#allocation4], 1 }

</bundles_post_ra>
